<compile_context>
chip_gen: v7x
topology: tpu7x:2x2x1
jax: 0.10.0
libtpu: 0.0.40
codegen_flags: <defaults>
</compile_context>

<pallas_src>
import jax
import jax.numpy as jnp
from jax import lax
from jax.experimental import pallas as pl
from jax.experimental.pallas import tpu as pltpu


def critic_kernel(x_ref, w1_ref, b1_ref, w2_ref, b2_ref, w3_ref, b3_ref, o_ref):
    # Layer 1: Linear(obs_dim -> 64) + Tanh  (MXU matmul, f32 accumulate; tanh on EUP)
    h1 = jnp.tanh(
        jnp.dot(x_ref[...], w1_ref[...], preferred_element_type=jnp.float32)
        + b1_ref[...]
    )
    # Layer 2: Linear(64 -> 64) + Tanh
    h2 = jnp.tanh(
        jnp.dot(h1.astype(w2_ref.dtype), w2_ref[...],
                preferred_element_type=jnp.float32)
        + b2_ref[...]
    )
    # Layer 3 (value head, 64 -> 1): broadcast-multiply on the VPU + lane reduce
    # on the XLU (both idle while the MXU runs layers 1-2) instead of an N=1
    # MXU matmul.  Result is stored lane-dense along the batch dimension.
    v = jnp.sum(h2 * w3_ref[...], axis=-1) + b3_ref[0, 0]      # (TB,)
    o_ref[...] = v[None, :].astype(o_ref.dtype)                # (1, TB) lane-dense


def critic_forward(x, w1, b1, w2, b2, w3, b3, *, block_rows=1024, use_bf16=False):
    batch, obs_dim = x.shape
    hidden = w1.shape[1]

    # Row tile: multiple of 128 (lane-dense output blocks, f32 sublane-aligned),
    # capped at block_rows.  Weights + one x tile + h1/h2 activations are a few
    # hundred KB of VMEM, far under the scoped default on every generation.
    tb = max(128, min(block_rows, pl.cdiv(batch, 128) * 128))
    tb = pl.cdiv(tb, 128) * 128
    padded = pl.cdiv(batch, tb) * tb
    if padded != batch:
        x = jnp.pad(x, ((0, padded - batch), (0, 0)))

    mxu_dtype = jnp.bfloat16 if use_bf16 else jnp.float32
    xk = x.astype(mxu_dtype)
    w1k = w1.astype(mxu_dtype)
    w2k = w2.astype(mxu_dtype)
    b1k = b1.reshape(1, hidden).astype(jnp.float32)
    b2k = b2.reshape(1, hidden).astype(jnp.float32)
    w3k = w3.reshape(1, hidden).astype(jnp.float32)   # row layout for the VPU value head
    b3k = b3.reshape(1, 1).astype(jnp.float32)        # scalar, lives in SMEM

    grid = (padded // tb,)
    out_row = pl.pallas_call(
        critic_kernel,
        out_shape=jax.ShapeDtypeStruct((1, padded), jnp.float32),
        grid=grid,
        in_specs=[
            pl.BlockSpec((tb, obs_dim), lambda i: (i, 0)),       # x: streamed per block
            pl.BlockSpec((obs_dim, hidden), lambda i: (0, 0)),   # w1: resident in VMEM
            pl.BlockSpec((1, hidden), lambda i: (0, 0)),         # b1
            pl.BlockSpec((hidden, hidden), lambda i: (0, 0)),    # w2
            pl.BlockSpec((1, hidden), lambda i: (0, 0)),         # b2
            pl.BlockSpec((1, hidden), lambda i: (0, 0)),         # w3 (row)
            pl.BlockSpec(memory_space=pltpu.MemorySpace.SMEM),   # b3 scalar
        ],
        out_specs=pl.BlockSpec((1, tb), lambda i: (0, i)),       # lane-dense values
        compiler_params=pltpu.CompilerParams(
            dimension_semantics=("parallel",),                   # megacore-shardable
        ),
    )(xk, w1k, b1k, w2k, b2k, w3k, b3k)

    return out_row[0, :batch].reshape(batch, 1)


def init_linear_params(key, fan_in, fan_out):
    # Deterministic init mimicking PyTorch nn.Linear default: U(-1/sqrt(fan_in), +1/sqrt(fan_in))
    kw, kb = jax.random.split(key)
    bound = 1.0 / jnp.sqrt(fan_in)
    w = jax.random.uniform(kw, (fan_in, fan_out), jnp.float32, -bound, bound)
    b = jax.random.uniform(kb, (1, fan_out), jnp.float32, -bound, bound)
    return w, b


def reference_forward(x, w1, b1, w2, b2, w3, b3):
    h1 = jnp.tanh(x @ w1 + b1)
    h2 = jnp.tanh(h1 @ w2 + b2)
    # Layer 3 at highest precision so it matches the kernel's exact-f32 VPU reduce.
    return jnp.dot(h2, w3, precision=lax.Precision.HIGHEST) + b3


if __name__ == "__main__":
    # Small shapes consistent with the module: obs_dim = 8 (e.g. LunarLander), batch = 8.
    batch, obs_dim, hidden = 8, 8, 64

    key = jax.random.PRNGKey(0)
    kx, kxb, k1, k2, k3 = jax.random.split(key, 5)

    x = jax.random.normal(kx, (batch, obs_dim), jnp.float32)
    w1, b1 = init_linear_params(k1, obs_dim, hidden)
    w2, b2 = init_linear_params(k2, hidden, hidden)
    w3, b3 = init_linear_params(k3, hidden, 1)

    # f32 path, single tile (grid = 1).
    ref = reference_forward(x, w1, b1, w2, b2, w3, b3)
    out = jax.block_until_ready(critic_forward(x, w1, b1, w2, b2, w3, b3))
    assert out.shape == (batch, 1)
    assert jnp.allclose(out, ref, atol=1e-4, rtol=1e-4), float(jnp.abs(out - ref).max())

    # f32 path, multi-block grid with a batch that is not a tile multiple (pad + slice).
    big = 1000
    xb = jax.random.normal(kxb, (big, obs_dim), jnp.float32)
    refb = reference_forward(xb, w1, b1, w2, b2, w3, b3)
    outb = jax.block_until_ready(critic_forward(xb, w1, b1, w2, b2, w3, b3))
    assert outb.shape == (big, 1)
    assert jnp.allclose(outb, refb, atol=1e-4, rtol=1e-4), float(jnp.abs(outb - refb).max())

    # bf16 MXU-operand fast path (v6e/v7x): f32 accumulation + f32 tanh, looser tolerance.
    outbf = jax.block_until_ready(
        critic_forward(xb, w1, b1, w2, b2, w3, b3, use_bf16=True))
    assert outbf.shape == (big, 1)
    assert jnp.allclose(outbf, refb, atol=5e-2, rtol=5e-2), float(jnp.abs(outbf - refb).max())

    print("KERNEL_OK")
</pallas_src>

<mosaic_0001>
module attributes {stable_mosaic.version = 11 : i64} {
  func.func @critic_kernel(%arg0: i32, %arg1: memref<128x8xf32, #tpu.memory_space<vmem>>, %arg2: memref<8x64xf32, #tpu.memory_space<vmem>>, %arg3: memref<1x64xf32, #tpu.memory_space<vmem>>, %arg4: memref<64x64xf32, #tpu.memory_space<vmem>>, %arg5: memref<1x64xf32, #tpu.memory_space<vmem>>, %arg6: memref<1x64xf32, #tpu.memory_space<vmem>>, %arg7: memref<1x1xf32, #tpu.memory_space<smem>>, %arg8: memref<1x128xf32, #tpu.memory_space<vmem>>) attributes {dimension_semantics = [#tpu.dimension_semantics<parallel>], iteration_bounds = array<i64: 1>, scalar_prefetch = 0 : i64, scratch_operands = 0 : i64, tpu.core_type = #tpu.core_type<tc>, window_params = [{transform_indices = @transform_0, window_bounds = array<i64: 128, 8>}, {pipeline_mode = #tpu.pipeline_mode<synchronous>, transform_indices = @transform_1, window_bounds = array<i64: 8, 64>}, {pipeline_mode = #tpu.pipeline_mode<synchronous>, transform_indices = @transform_2, window_bounds = array<i64: 1, 64>}, {pipeline_mode = #tpu.pipeline_mode<synchronous>, transform_indices = @transform_3, window_bounds = array<i64: 64, 64>}, {pipeline_mode = #tpu.pipeline_mode<synchronous>, transform_indices = @transform_4, window_bounds = array<i64: 1, 64>}, {pipeline_mode = #tpu.pipeline_mode<synchronous>, transform_indices = @transform_5, window_bounds = array<i64: 1, 64>}, {transform_indices = @transform_6, window_bounds = array<i64: 1, 1>}, {transform_indices = @transform_7, window_bounds = array<i64: 1, 128>}]} {
    %c0 = arith.constant 0 : index
    %c0_0 = arith.constant 0 : index
    %0 = vector.load %arg1[%c0, %c0_0] : memref<128x8xf32, #tpu.memory_space<vmem>>, vector<128x8xf32>
    %c0_1 = arith.constant 0 : index
    %c0_2 = arith.constant 0 : index
    %1 = vector.load %arg2[%c0_1, %c0_2] : memref<8x64xf32, #tpu.memory_space<vmem>>, vector<8x64xf32>
    %cst = arith.constant dense<0.000000e+00> : vector<128x64xf32>
    %2 = tpu.matmul %0, %1, %cst {dimension_numbers = #tpu.dot_dimension_numbers<[1], [0], [0], [1], [0, 0, 1, 1], [], []>} : vector<128x8xf32>, vector<8x64xf32>, vector<128x64xf32> -> vector<128x64xf32>
    %c0_3 = arith.constant 0 : index
    %c0_4 = arith.constant 0 : index
    %3 = vector.load %arg3[%c0_3, %c0_4] : memref<1x64xf32, #tpu.memory_space<vmem>>, vector<1x64xf32>
    %4 = vector.broadcast %3 : vector<1x64xf32> to vector<128x64xf32>
    %5 = arith.addf %2, %4 : vector<128x64xf32>
    %6 = math.tanh %5 : vector<128x64xf32>
    %c0_5 = arith.constant 0 : index
    %c0_6 = arith.constant 0 : index
    %7 = vector.load %arg4[%c0_5, %c0_6] : memref<64x64xf32, #tpu.memory_space<vmem>>, vector<64x64xf32>
    %cst_7 = arith.constant dense<0.000000e+00> : vector<128x64xf32>
    %8 = tpu.matmul %6, %7, %cst_7 {dimension_numbers = #tpu.dot_dimension_numbers<[1], [0], [0], [1], [0, 0, 1, 1], [], []>} : vector<128x64xf32>, vector<64x64xf32>, vector<128x64xf32> -> vector<128x64xf32>
    %c0_8 = arith.constant 0 : index
    %c0_9 = arith.constant 0 : index
    %9 = vector.load %arg5[%c0_8, %c0_9] : memref<1x64xf32, #tpu.memory_space<vmem>>, vector<1x64xf32>
    %10 = vector.broadcast %9 : vector<1x64xf32> to vector<128x64xf32>
    %11 = arith.addf %8, %10 : vector<128x64xf32>
    %12 = math.tanh %11 : vector<128x64xf32>
    %c0_10 = arith.constant 0 : index
    %c0_11 = arith.constant 0 : index
    %13 = vector.load %arg6[%c0_10, %c0_11] : memref<1x64xf32, #tpu.memory_space<vmem>>, vector<1x64xf32>
    %14 = vector.broadcast %13 : vector<1x64xf32> to vector<128x64xf32>
    %15 = arith.mulf %12, %14 : vector<128x64xf32>
    %cst_12 = arith.constant dense<0.000000e+00> : vector<128xf32>
    %16 = vector.multi_reduction <add>, %15, %cst_12 [1] : vector<128x64xf32> to vector<128xf32>
    %c0_13 = arith.constant 0 : index
    %c0_14 = arith.constant 0 : index
    %17 = memref.load %arg7[%c0_13, %c0_14] : memref<1x1xf32, #tpu.memory_space<smem>>
    %18 = vector.broadcast %17 : f32 to vector<128xf32>
    %19 = arith.addf %16, %18 : vector<128xf32>
    %20 = vector.shape_cast %19 : vector<128xf32> to vector<1x128xf32>
    %c0_15 = arith.constant 0 : index
    %c0_16 = arith.constant 0 : index
    %21 = vector.load %arg8[%c0_15, %c0_16] : memref<1x128xf32, #tpu.memory_space<vmem>>, vector<1x128xf32>
    tpu.vector_store %arg8[%c0_15, %c0_16], %20 {strides = array<i32>} : memref<1x128xf32, #tpu.memory_space<vmem>>, vector<1x128xf32>,
    return
  }
  func.func @transform_0(%arg0: i32) -> (i32, i32) {
    %c0_i32 = arith.constant 0 : i32
    %c0_i32_0 = arith.constant 0 : i32
    return %arg0, %c0_i32 : i32, i32
  }
  func.func @transform_1(%arg0: i32) -> (i32, i32) {
    %c0_i32 = arith.constant 0 : i32
    %c0_i32_0 = arith.constant 0 : i32
    %c0_i32_1 = arith.constant 0 : i32
    return %c0_i32, %c0_i32_0 : i32, i32
  }
  func.func @transform_2(%arg0: i32) -> (i32, i32) {
    %c0_i32 = arith.constant 0 : i32
    %c0_i32_0 = arith.constant 0 : i32
    %c0_i32_1 = arith.constant 0 : i32
    return %c0_i32, %c0_i32_0 : i32, i32
  }
  func.func @transform_3(%arg0: i32) -> (i32, i32) {
    %c0_i32 = arith.constant 0 : i32
    %c0_i32_0 = arith.constant 0 : i32
    %c0_i32_1 = arith.constant 0 : i32
    return %c0_i32, %c0_i32_0 : i32, i32
  }
  func.func @transform_4(%arg0: i32) -> (i32, i32) {
    %c0_i32 = arith.constant 0 : i32
    %c0_i32_0 = arith.constant 0 : i32
    %c0_i32_1 = arith.constant 0 : i32
    return %c0_i32, %c0_i32_0 : i32, i32
  }
  func.func @transform_5(%arg0: i32) -> (i32, i32) {
    %c0_i32 = arith.constant 0 : i32
    %c0_i32_0 = arith.constant 0 : i32
    %c0_i32_1 = arith.constant 0 : i32
    return %c0_i32, %c0_i32_0 : i32, i32
  }
  func.func @transform_6(%arg0: i32) -> (i32, i32) {
    %c0_i32 = arith.constant 0 : i32
    %c0_i32_0 = arith.constant 0 : i32
    %c0_i32_1 = arith.constant 0 : i32
    return %c0_i32, %c0_i32_0 : i32, i32
  }
  func.func @transform_7(%arg0: i32) -> (i32, i32) {
    %c0_i32 = arith.constant 0 : i32
    %c0_i32_0 = arith.constant 0 : i32
    return %c0_i32, %arg0 : i32, i32
  }
}

</mosaic_0001>

<bundles_post_ra>
// kernel: tpu_custom_call.1
= control target key start
LH: loop header
LB: loop body
LE: loop exit
PB: predicated region body
PF: predicated region fallthrough
CT: control target
= control target key end

     0   :  { %vm52_vm0 = vcmask 64512   ;;  %s1271_s0 = inlined_call_operand.vmem [shape: f32[128,8], index: 0, kind: input, shape index: {}]   ;;  %s1272_s1 = inlined_call_operand.vmem [shape: f32[8,64], index: 1, kind: input, shape index: {}]   ;;  %s1273_s2 = inlined_call_operand.vmem [shape: f32[1,64], index: 2, kind: input, shape index: {}]   ;;  %s1274_s3 = inlined_call_operand.vmem [shape: f32[64,64], index: 3, kind: input, shape index: {}]   ;;  %s1275_s4 = inlined_call_operand.vmem [shape: f32[1,64], index: 4, kind: input, shape index: {}]   ;;  %s1276_s5 = inlined_call_operand.vmem [shape: f32[1,64], index: 5, kind: input, shape index: {}]   ;;  %s1277_s6 = inlined_call_operand.<no memory space> [shape: f32[1,1], index: 6, kind: input, shape index: {}]   ;;  %s1278_s7 = inlined_call_operand.hbm [shape: f32[1,128], index: 7, kind: output, shape index: {}]  }
   0x1   :  { %v44_v0 = vld [vmem:[%s1272_s1] sm:$0xff]  ;;  %v29_v2 = vld [vmem:[%s1271_s0 + $0x8] sm:$0xff]  ;;  %v30_v3 = vld [vmem:[%s1271_s0 + $0x10] sm:$0xff] }
   0x2   :  { %v28_v1 = vld [vmem:[%s1271_s0] sm:$0xff]  ;;  %795 = vmatprep.subr.mxu0 %v44_v0  ;;  %v31_v4 = vld [vmem:[%s1271_s0 + $0x18] sm:$0xff]  ;;  %v263_v7 = vld [vmem:[%s1274_s3 + $0x8] sm:$0xff] }
   0x3   :  { %797 = vmatprep.mubr.msk.f32.mxu0 %vm52_vm0, %v28_v1  ;;  %796 = vmatpush3.msra.mxu0 %v44_v0  ;;  %v32_v5 = vld [vmem:[%s1271_s0 + $0x20] sm:$0xff]  ;;  %v264_v8 = vld [vmem:[%s1274_s3 + $0x10] sm:$0xff]  ;;  %v265_v9 = vld [vmem:[%s1274_s3 + $0x18] sm:$0xff] }
   0x4   :  { %798 = vmatmul.mubr.msk.f32.vlgmr.msra.gmra.mrb[0].mxu0 %vm52_vm0, %v29_v2  ;;  %v262_v6 = vld [vmem:[%s1274_s3] sm:$0xff]  ;;  %v865_v11 = vpack.c.bf16 %v265_v9, %v264_v8 }
   0x5   :  { %800 = vmatprep.mubr.msk.f32.mxu0 %vm52_vm0, %v30_v3  ;;  %v861_v10 = vpack.c.bf16 %v263_v7, %v262_v6 }
   0x8   :  { %801 = vmatmul.mubr.msk.f32.gmra.mrb[2].mxu0 %vm52_vm0, %v31_v4 }
   0x9   :  { %13 = vsyncpa [#allocation4], 0  ;;  %803 = vmatprep.mubr.msk.f32.mxu0 %vm52_vm0, %v32_v5  ;;  %v33_v12 = vld [vmem:[%s1271_s0 + $0x28] sm:$0xff]  ;;  %v34_v13 = vld [vmem:[%s1271_s0 + $0x30] sm:$0xff]  ;;  %862 = vmatprep.subr.bf16.mxu0 %v861_v10  ;;  %vm277_vm1 = vcmask 523264   ;;  %vm603_vm2 = vcmask 130112  }
   0xa   :  { %877 = vmatprep.subr.bf16.mxu1 %v861_v10  ;;  %864 = vmatpush3.bf16.msra.mxu0 %v861_v10  ;;  %v35_v14 = vld [vmem:[%s1271_s0 + $0x38] sm:$0xff]  ;;  %v36_v15 = vld [vmem:[%s1271_s0 + $0x40] sm:$0xff]  ;;  %v37_v16 = vld [vmem:[%s1271_s0 + $0x48] sm:$0xff]  ;;  %vm610_vm3 = vcmask 195712   ;;  %vm617_vm4 = vcmask 261312   ;;  %vm624_vm5 = vcmask 326912  }
   0xb   :  { %881 = vmatpush3.bf16.msra.mxu1 %v861_v10  ;;  %866 = vmatprep.subr.bf16.mxu0 %v865_v11  ;;  %v38_v17 = vld [vmem:[%s1271_s0 + $0x50] sm:$0xff]  ;;  %v39_v18 = vld [vmem:[%s1271_s0 + $0x58] sm:$0xff]  ;;  %v40_v19 = vld [vmem:[%s1271_s0 + $0x60] sm:$0xff]  ;;  %vm631_vm6 = vcmask 392512   ;;  %vm638_vm7 = vcmask 458112   ;;  %vm645_vm8 = vcmask 523712  }
   0xc   :  { %804 = vmatmul.mubr.msk.f32.gmra.mrb[4].mxu0 %vm52_vm0, %v33_v12  ;;  %878 = vmatprep.subr.bf16.mxu1 %v865_v11  ;;  %v41_v20 = vld [vmem:[%s1271_s0 + $0x68] sm:$0xff]  ;;  %v42_v21 = vld [vmem:[%s1271_s0 + $0x70] sm:$0xff]  ;;  %v43_v22 = vld [vmem:[%s1271_s0 + $0x78] sm:$0xff]  ;;  %vm652_vm9 = vcmask 589312   ;;  %vm659_vm10 = vcmask 654912   ;;  %vm666_vm11 = vcmask 720512  }
   0xd   :  { %806 = vmatprep.mubr.msk.f32.mxu0 %vm52_vm0, %v34_v13  ;;  %v266_v23 = vld [vmem:[%s1274_s3 + $0x20] sm:$0xff]  ;;  %v267_v24 = vld [vmem:[%s1274_s3 + $0x28] sm:$0xff]  ;;  %v268_v26 = vld [vmem:[%s1274_s3 + $0x30] sm:$0xff]  ;;  %vm673_vm12 = vcmask 786112   ;;  %vm680_vm13 = vcmask 851712   ;;  %vm687_vm14 = vcmask 917312  }
   0xe   :  { %868 = vmatpush3.bf16.msra.mxu0 %v865_v11  ;;  %v869_v25 = vpack.c.bf16 %v267_v24, %v266_v23  ;;  %v269_v27 = vld [vmem:[%s1274_s3 + $0x38] sm:$0xff]  ;;  %v1109_v29 = vld [vmem:[%s1273_s2] ss:$0 sm:$0xff]  ;;  %vm694_vm15 = vcmask 982912  }
   0xf   :  { %882 = vmatpush3.bf16.msra.mxu1 %v865_v11  ;;  %v873_v28 = vpack.c.bf16 %v269_v27, %v268_v26  ;;  %v1157_v27 = vld [vmem:[%s1276_s5] ss:$0 sm:$0xff] }
  0x10   :  { %807 = vmatmul.mubr.msk.f32.gmra.mrb[6].mxu0 %vm52_vm0, %v35_v14  ;;  %870 = vmatprep.subr.bf16.mxu0 %v869_v25  ;;  %v1146_v14 = vld [vmem:[%s1275_s4] ss:$0 sm:$0xff] }
  0x11   :  { %809 = vmatprep.mubr.msk.f32.mxu0 %vm52_vm0, %v36_v15  ;;  %879 = vmatprep.subr.bf16.mxu1 %v869_v25 }
  0x12   :  { %872 = vmatpush3.bf16.msra.mxu0 %v869_v25 }
  0x13   :  { %883 = vmatpush3.bf16.msra.mxu1 %v869_v25  ;;  %874 = vmatprep.subr.bf16.mxu0 %v873_v28 }
  0x14   :  { %810 = vmatmul.mubr.msk.f32.gmra.mrb[8].mxu0 %vm52_vm0, %v37_v16  ;;  %880 = vmatprep.subr.bf16.mxu1 %v873_v28 }
  0x15   :  { %812 = vmatprep.mubr.msk.f32.mxu0 %vm52_vm0, %v38_v17 }
  0x16   :  { %876 = vmatpush3.bf16.msra.mxu0 %v873_v28 }
  0x17   :  { %884 = vmatpush3.bf16.msra.mxu1 %v873_v28 }
  0x18   :  { %813 = vmatmul.mubr.msk.f32.gmra.mrb[10].mxu0 %vm52_vm0, %v39_v18 }
  0x19   :  { %815 = vmatprep.mubr.msk.f32.mxu0 %vm52_vm0, %v40_v19 }
  0x1c   :  { %816 = vmatmul.mubr.msk.f32.gmra.mrb[12].mxu0 %vm52_vm0, %v41_v20 }
  0x1d   :  { %818 = vmatprep.mubr.msk.f32.mxu0 %vm52_vm0, %v42_v21 }
  0x20   :  { %819 = vmatmul.mubr.msk.f32.gmra.mrb[14].mxu0 %vm52_vm0, %v43_v22  ;;  %vm701_vm0 = vcmask 1048512  }
  0xd7   :  { %v799_v30 = vpop.f32.mrb[0].mxu0 }
  0xd8   :  { %v173_v31 = vadd.f32 %v799_v30, %v1109_v29  ;;  %v167_v32 = vpop.f32.mrb[1].mxu0 }
  0xd9   :  { %v168_v33 = vadd.f32 %v1109_v29, %v167_v32 }
  0xdb   :  { %886 = vtanh.f32 %v168_v33  ;;  %v802_v34 = vpop.f32.mrb[2].mxu0 }
  0xdc   :  { %888 = vtanh.f32 %v173_v31  ;;  %v183_v35 = vadd.f32 %v802_v34, %v1109_v29  ;;  %v177_v36 = vpop.f32.mrb[3].mxu0 }
  0xdd   :  { %v178_v37 = vadd.f32 %v1109_v29, %v177_v36 }
  0xdf   :  { %890 = vtanh.f32 %v178_v37  ;;  %v805_v38 = vpop.f32.mrb[4].mxu0 }
  0xe0   :  { %892 = vtanh.f32 %v183_v35  ;;  %v193_v39 = vadd.f32 %v805_v38, %v1109_v29  ;;  %v187_v40 = vpop.f32.mrb[5].mxu0 }
  0xe1   :  { %v188_v41 = vadd.f32 %v1109_v29, %v187_v40 }
  0xe2   :  { %894 = vtanh.f32 %v193_v39 }
  0xe3   :  { %896 = vtanh.f32 %v188_v41  ;;  %v808_v42 = vpop.f32.mrb[6].mxu0 }
  0xe4   :  { %v203_v43 = vadd.f32 %v808_v42, %v1109_v29  ;;  %v197_v44 = vpop.f32.mrb[7].mxu0 }
  0xe5   :  { %v887_v45 = vpop.eup %886  ;;  %v198_v46 = vadd.f32 %v1109_v29, %v197_v44 }
  0xe6   :  { %v889_v47 = vpop.eup %888  ;;  %898 = vtanh.f32 %v203_v43  ;;  %837 = vmatprep.mubr.msk.f32.mxu0 %vm277_vm1, %v887_v45 }
  0xe7   :  { %900 = vtanh.f32 %v198_v46  ;;  %v811_v48 = vpop.f32.mrb[8].mxu0  ;;  %838 = vmatmul.mubr.msk.f32.vlgmr.msra.gmra.mrb[16].mxu0 %vm277_vm1, %v889_v47 }
  0xe8   :  { %v213_v49 = vadd.f32 %v811_v48, %v1109_v29  ;;  %v207_v50 = vpop.f32.mrb[9].mxu0 }
  0xe9   :  { %v891_v51 = vpop.eup %890  ;;  %v208_v52 = vadd.f32 %v1109_v29, %v207_v50 }
  0xea   :  { %v893_v53 = vpop.eup %892  ;;  %902 = vtanh.f32 %v213_v49  ;;  %840 = vmatprep.mubr.msk.f32.mxu1 %vm277_vm1, %v891_v51 }
  0xeb   :  { %904 = vtanh.f32 %v208_v52  ;;  %v814_v54 = vpop.f32.mrb[10].mxu0  ;;  %841 = vmatmul.mubr.msk.f32.vlgmr.msra.gmra.mrb[0].mxu1 %vm277_vm1, %v893_v53 }
  0xec   :  { %v895_v55 = vpop.eup %894  ;;  %v223_v56 = vadd.f32 %v814_v54, %v1109_v29  ;;  %v217_v57 = vpop.f32.mrb[11].mxu0 }
  0xed   :  { %v897_v58 = vpop.eup %896  ;;  %v218_v59 = vadd.f32 %v1109_v29, %v217_v57 }
  0xee   :  { %906 = vtanh.f32 %v223_v56  ;;  %843 = vmatprep.mubr.msk.f32.mxu1 %vm277_vm1, %v897_v58 }
  0xef   :  { %908 = vtanh.f32 %v218_v59  ;;  %v817_v60 = vpop.f32.mrb[12].mxu0  ;;  %844 = vmatmul.mubr.msk.f32.gmra.mrb[2].mxu1 %vm277_vm1, %v895_v55 }
  0xf0   :  { %v899_v61 = vpop.eup %898  ;;  %v233_v62 = vadd.f32 %v817_v60, %v1109_v29  ;;  %v227_v63 = vpop.f32.mrb[13].mxu0 }
  0xf1   :  { %v901_v0 = vpop.eup %900  ;;  %v228_v1 = vadd.f32 %v1109_v29, %v227_v63 }
  0xf2   :  { %910 = vtanh.f32 %v233_v62  ;;  %846 = vmatprep.mubr.msk.f32.mxu1 %vm277_vm1, %v901_v0 }
  0xf3   :  { %912 = vtanh.f32 %v228_v1  ;;  %v820_v2 = vpop.f32.mrb[14].mxu0  ;;  %847 = vmatmul.mubr.msk.f32.gmra.mrb[4].mxu1 %vm277_vm1, %v899_v61 }
  0xf4   :  { %v903_v3 = vpop.eup %902  ;;  %v243_v4 = vadd.f32 %v820_v2, %v1109_v29  ;;  %v237_v5 = vpop.f32.mrb[15].mxu0 }
  0xf5   :  { %v905_v6 = vpop.eup %904  ;;  %v238_v7 = vadd.f32 %v1109_v29, %v237_v5 }
  0xf6   :  { %914 = vtanh.f32 %v243_v4  ;;  %849 = vmatprep.mubr.msk.f32.mxu1 %vm277_vm1, %v905_v6 }
  0xf7   :  { %916 = vtanh.f32 %v238_v7  ;;  %850 = vmatmul.mubr.msk.f32.gmra.mrb[6].mxu1 %vm277_vm1, %v903_v3 }
  0xf8   :  { %v907_v8 = vpop.eup %906 }
  0xf9   :  { %v909_v9 = vpop.eup %908 }
  0xfa   :  { %852 = vmatprep.mubr.msk.f32.mxu1 %vm277_vm1, %v909_v9 }
  0xfb   :  { %853 = vmatmul.mubr.msk.f32.gmra.mrb[8].mxu1 %vm277_vm1, %v907_v8 }
  0xfc   :  { %v911_v10 = vpop.eup %910 }
  0xfd   :  { %v913_v11 = vpop.eup %912 }
  0xfe   :  { %855 = vmatprep.mubr.msk.f32.mxu1 %vm277_vm1, %v913_v11 }
  0xff   :  { %856 = vmatmul.mubr.msk.f32.gmra.mrb[10].mxu1 %vm277_vm1, %v911_v10 }
 0x100   :  { %v915_v12 = vpop.eup %914 }
 0x101   :  { %v917_v13 = vpop.eup %916 }
 0x102   :  { %858 = vmatprep.mubr.msk.f32.mxu1 %vm277_vm1, %v917_v13 }
 0x103   :  { %859 = vmatmul.mubr.msk.f32.gmra.mrb[12].mxu1 %vm277_vm1, %v915_v12 }
 0x1ba   :  { %v839_v15 = vpop.f32.mrb[16].mxu0 }
 0x1bb   :  { %v398_v16 = vadd.f32 %v839_v15, %v1146_v14  ;;  %v392_v17 = vpop.f32.mrb[17].mxu0 }
 0x1bc   :  { %v393_v18 = vadd.f32 %v1146_v14, %v392_v17 }
 0x1bd   :  { %918 = vtanh.f32 %v398_v16 }
 0x1be   :  { %920 = vtanh.f32 %v393_v18  ;;  %v842_v19 = vpop.f32.mrb[0].mxu1 }
 0x1bf   :  { %v408_v20 = vadd.f32 %v842_v19, %v1146_v14  ;;  %v402_v21 = vpop.f32.mrb[1].mxu1 }
 0x1c0   :  { %v403_v22 = vadd.f32 %v1146_v14, %v402_v21 }
 0x1c1   :  { %922 = vtanh.f32 %v408_v20 }
 0x1c2   :  { %924 = vtanh.f32 %v403_v22  ;;  %v845_v23 = vpop.f32.mrb[2].mxu1 }
 0x1c3   :  { %v418_v24 = vadd.f32 %v845_v23, %v1146_v14  ;;  %v412_v25 = vpop.f32.mrb[3].mxu1 }
 0x1c4   :  { %v413_v26 = vadd.f32 %v1146_v14, %v412_v25 }
 0x1c5   :  { %926 = vtanh.f32 %v418_v24 }
 0x1c6   :  { %928 = vtanh.f32 %v413_v26  ;;  %v848_v28 = vpop.f32.mrb[4].mxu1 }
 0x1c7   :  { %v919_v29 = vpop.eup %918  ;;  %v428_v30 = vadd.f32 %v848_v28, %v1146_v14  ;;  %v422_v31 = vpop.f32.mrb[5].mxu1 }
 0x1c8   :  { %v921_v32 = vpop.eup %920  ;;  %v423_v33 = vadd.f32 %v1146_v14, %v422_v31  ;;  %v495_v34 = vmul.f32 %v919_v29, %v1157_v27 }
 0x1c9   :  { %930 = vtanh.f32 %v428_v30  ;;  %v494_v37 = vmul.f32 %v921_v32, %v1157_v27 }
 0x1ca   :  { %932 = vtanh.f32 %v423_v33  ;;  %v851_v35 = vpop.f32.mrb[6].mxu1  ;;  %v513_v36 = vsel %vm277_vm1, %v495_v34, 0.0  ;;  %v592_v33 = vlaneseq }
 0x1cb   :  { %v923_v38 = vpop.eup %922  ;;  %v438_v39 = vadd.f32 %v851_v35, %v1146_v14  ;;  %v432_v40 = vpop.f32.mrb[7].mxu1  ;;  %514 = vadd.xlane.f32.xlu0 %v513_v36  ;;  %v510_v46 = vsel %vm277_vm1, %v494_v37, 0.0 }
 0x1cc   :  { %v925_v41 = vpop.eup %924  ;;  %v433_v42 = vadd.f32 %v1146_v14, %v432_v40  ;;  %v497_v43 = vmul.f32 %v923_v38, %v1157_v27  ;;  %v1201_v34 = vand.u32 127, %v592_v33  ;;  %v1203_v36 = vshrl.u32 %v592_v33, 7 }
 0x1cd   :  { %934 = vtanh.f32 %v438_v39  ;;  %v496_v47 = vmul.f32 %v925_v41, %v1157_v27  ;;  %v1209_v38 = vstv %s1277_s6  ;;  %s974_s6 = smov [#allocation3]  }
 0x1ce   :  { %936 = vtanh.f32 %v433_v42  ;;  %v854_v44 = vpop.f32.mrb[8].mxu1  ;;  %v519_v45 = vsel %vm277_vm1, %v497_v43, 0.0  ;;  %v598_v37 = vadd.s32 4294967288, %v1201_v34  ;;  %v612_v39 = vadd.s32 4294967272, %v1201_v34  ;;  %s711_s29 = sshll.u32 %s974_s6, 4  ;;  %s712_s29 = int_to_ptr.vmem [resolvable:$true] %s711_s29 }
 0x1cf   :  { %v927_v48 = vpop.eup %926  ;;  %v448_v49 = vadd.f32 %v854_v44, %v1146_v14  ;;  %520 = vadd.xlane.f32.xlu1 %v519_v45  ;;  %v442_v50 = vpop.f32.mrb[9].mxu1  ;;  %511 = vadd.xlane.f32.xlu0 %v510_v46  ;;  %v516_v55 = vsel %vm277_vm1, %v496_v47, 0.0  ;;  %v596_v41 = vsub.s32 %v1201_v34, %v1203_v36  ;;  %v619_v43 = vadd.s32 4294967264, %v1201_v34  ;;  %s950_s30 = scalar_lea.vmem %s712_s29, 16  ;;  %s954_s8 = scalar_lea.vmem %s712_s29, 32 }
 0x1d0   :  { %v929_v51 = vpop.eup %928  ;;  %v443_v52 = vadd.f32 %v1146_v14, %v442_v50  ;;  %v499_v56 = vmul.f32 %v927_v48, %v1157_v27  ;;  %v601_v45 = vsub.s32 %v598_v37, %v1203_v36  ;;  %v626_v47 = vadd.s32 4294967256, %v1201_v34  ;;  %p951_p0 = scmp.ne.s32.totalorder %s712_s29, %s950_s30  ;;  %p955_p1 = scmp.lt.s32.totalorder %s712_s29, %s712_s29 }
 0x1d1   :  { %938 = vtanh.f32 %v448_v49  ;;  %v498_v53 = vmul.f32 %v929_v51, %v1157_v27  ;;  %v633_v49 = vadd.s32 4294967248, %v1201_v34  ;;  %v615_v50 = vsub.s32 %v612_v39, %v1203_v36  ;;  %p956_p2 = scmp.lt.s32.totalorder %s954_s8, %s950_s30 }
 0x1d2   :  { %940 = vtanh.f32 %v443_v52  ;;  %v857_v54 = vpop.f32.mrb[10].mxu1  ;;  %v525_v1 = vsel %vm277_vm1, %v499_v56, 0.0 }
 0x1d3   :  { %v931_v57 = vpop.eup %930  ;;  %v458_v58 = vadd.f32 %v857_v54, %v1146_v14  ;;  %v452_v59 = vpop.f32.mrb[11].mxu1  ;;  %517 = vadd.xlane.f32.xlu1 %v516_v55  ;;  %v522_v60 = vsel %vm277_vm1, %v498_v53, 0.0  ;;  %v622_v54 = vsub.s32 %v619_v43, %v1203_v36  ;;  %v689_v43 = vadd.s32 4294967184, %v1201_v34  ;;  %p957_p3 = por %p956_p2, %p955_p1 }
 0x1d4   :  { %v933_v61 = vpop.eup %932  ;;  %v453_v62 = vadd.f32 %v1146_v14, %v452_v59  ;;  %523 = vadd.xlane.f32.xlu0 %v522_v60  ;;  %v501_v2 = vmul.f32 %v931_v57, %v1157_v27  ;;  %v629_v59 = vsub.s32 %v626_v47, %v1203_v36 }
 0x1d5   :  { %942 = vtanh.f32 %v458_v58  ;;  %v500_v63 = vmul.f32 %v933_v61, %v1157_v27  ;;  %v636_v61 = vsub.s32 %v633_v49, %v1203_v36  ;;  %p958_p4 = pnand %p957_p3, %p951_p0 }
 0x1d6   :  { %944 = vtanh.f32 %v453_v62  ;;  %v860_v0 = vpop.f32.mrb[12].mxu1  ;;  %v531_v10 = vsel %vm277_vm1, %v501_v2, 0.0  ;;  %v640_v62 = vadd.s32 4294967240, %v1201_v34 }
 0x1d7   :  { %v935_v3 = vpop.eup %934  ;;  %v468_v4 = vadd.f32 %v860_v0, %v1146_v14  ;;  %v462_v5 = vpop.f32.mrb[13].mxu1  ;;  %526 = vadd.xlane.f32.xlu1 %v525_v1  ;;  %v528_v6 = vsel %vm277_vm1, %v500_v63, 0.0 }
 0x1d8   :  { %v937_v7 = vpop.eup %936  ;;  %v463_v8 = vadd.f32 %v1146_v14, %v462_v5  ;;  %529 = vadd.xlane.f32.xlu0 %v528_v6  ;;  %v503_v11 = vmul.f32 %v935_v3, %v1157_v27  ;;  %v647_v3 = vadd.s32 4294967232, %v1201_v34 }
 0x1d9   :  { %946 = vtanh.f32 %v468_v4  ;;  %v502_v9 = vmul.f32 %v937_v7, %v1157_v27 }
 0x1da   :  { %948 = vtanh.f32 %v463_v8  ;;  %v537_v17 = vsel %vm277_vm1, %v503_v11, 0.0  ;;  %v643_v11 = vsub.s32 %v640_v62, %v1203_v36 }
 0x1db   :  { %v939_v12 = vpop.eup %938  ;;  %532 = vadd.xlane.f32.xlu1 %v531_v10  ;;  %v534_v13 = vsel %vm277_vm1, %v502_v9, 0.0 }
 0x1dc   :  { %v941_v15 = vpop.eup %940  ;;  %535 = vadd.xlane.f32.xlu0 %v534_v13  ;;  %v505_v14 = vmul.f32 %v939_v12, %v1157_v27  ;;  %v654_v12 = vadd.s32 4294967224, %v1201_v34 }
 0x1dd   :  { %v504_v16 = vmul.f32 %v941_v15, %v1157_v27 }
 0x1de   :  { %v543_v22 = vsel %vm277_vm1, %v505_v14, 0.0 }
 0x1df   :  { %v943_v18 = vpop.eup %942  ;;  %538 = vadd.xlane.f32.xlu1 %v537_v17  ;;  %v540_v19 = vsel %vm277_vm1, %v504_v16, 0.0  ;;  %v650_v16 = vsub.s32 %v647_v3, %v1203_v36  ;;  %v661_v17 = vadd.s32 4294967216, %v1201_v34 }
 0x1e0   :  { %v945_v20 = vpop.eup %944  ;;  %541 = vadd.xlane.f32.xlu0 %v540_v19  ;;  %v507_v23 = vmul.f32 %v943_v18, %v1157_v27 }
 0x1e1   :  { %v506_v21 = vmul.f32 %v945_v20, %v1157_v27 }
 0x1e2   :  { %v549_v29 = vsel %vm277_vm1, %v507_v23, 0.0  ;;  %v668_v23 = vadd.s32 4294967208, %v1201_v34 }
 0x1e3   :  { %v947_v24 = vpop.eup %946  ;;  %544 = vadd.xlane.f32.xlu1 %v543_v22  ;;  %v546_v25 = vsel %vm277_vm1, %v506_v21, 0.0  ;;  %v657_v22 = vsub.s32 %v654_v12, %v1203_v36 }
 0x1e4   :  { %v949_v26 = vpop.eup %948  ;;  %547 = vadd.xlane.f32.xlu0 %v546_v25  ;;  %v509_v30 = vmul.f32 %v947_v24, %v1157_v27  ;;  %v671_v37 = vsub.s32 %v668_v23, %v1203_v36 }
 0x1e5   :  { %v508_v28 = vmul.f32 %v949_v26, %v1157_v27  ;;  %v605_v27 = vadd.s32 4294967280, %v1201_v34 }
 0x1e6   :  { %v555_v32 = vsel %vm277_vm1, %v509_v30, 0.0 }
 0x1e7   :  { %550 = vadd.xlane.f32.xlu1 %v549_v29  ;;  %v552_v31 = vsel %vm277_vm1, %v508_v28, 0.0  ;;  %v608_v48 = vsub.s32 %v605_v27, %v1203_v36  ;;  %v664_v28 = vsub.s32 %v661_v17, %v1203_v36  ;;  %v675_v29 = vadd.s32 4294967200, %v1201_v34 }
 0x1e8   :  { %553 = vadd.xlane.f32.xlu0 %v552_v31  ;;  %v682_v27 = vadd.s32 4294967192, %v1201_v34 }
 0x1ea   :  { %v685_v49 = vsub.s32 %v682_v27, %v1203_v36 }
 0x1eb   :  { %556 = vadd.xlane.f32.xlu1 %v555_v32 }
 0x258   :  { %v515_v35 = vpop.xlane.xlu0 %514 }
 0x259   :  { %v561_v46 = vadd.f32 %v1209_v38, %v515_v35 }
 0x25b   :  { %v602_v57 = vrot.slane %v561_v46, %v601_v45 }
 0x25c   :  { %v521_v40 = vpop.xlane.xlu1 %520  ;;  %v512_v42 = vpop.xlane.xlu0 %511 }
 0x25d   :  { %v560_v44 = vadd.f32 %v1209_v38, %v512_v42  ;;  %v563_v51 = vadd.f32 %v1209_v38, %v521_v40  ;;  %v678_v42 = vsub.s32 %v675_v29, %v1203_v36 }
 0x25f   :  { %v597_v52 = vrot.slane %v560_v44, %v596_v41  ;;  %v616_v63 = vrot.slane %v563_v51, %v615_v50  ;;  %v696_v50 = vadd.s32 4294967176, %v1201_v34 }
 0x260   :  { %v518_v53 = vpop.xlane.xlu1 %517 }
 0x261   :  { %v562_v55 = vadd.f32 %v1209_v38, %v518_v53  ;;  %v524_v56 = vpop.xlane.xlu0 %523  ;;  %v604_v0 = vsel %vm603_vm2, %v602_v57, %v597_v52 }
 0x262   :  { %v564_v58 = vadd.f32 %v1209_v38, %v524_v56 }
 0x263   :  { %v609_v60 = vrot.slane %v562_v55, %v608_v48 }
 0x264   :  { %v623_v1 = vrot.slane %v564_v58, %v622_v54  ;;  %v527_v2 = vpop.xlane.xlu1 %526  ;;  %v692_v54 = vsub.s32 %v689_v43, %v1203_v36 }
 0x265   :  { %v611_v4 = vsel %vm610_vm3, %v609_v60, %v604_v0  ;;  %v565_v5 = vadd.f32 %v1209_v38, %v527_v2  ;;  %v530_v6 = vpop.xlane.xlu0 %529  ;;  %v699_v60 = vsub.s32 %v696_v50, %v1203_v36 }
 0x266   :  { %v618_v7 = vsel %vm617_vm4, %v616_v63, %v611_v4  ;;  %v566_v8 = vadd.f32 %v1209_v38, %v530_v6 }
 0x267   :  { %v625_v9 = vsel %vm624_vm5, %v623_v1, %v618_v7  ;;  %v630_v10 = vrot.slane %v565_v5, %v629_v59 }
 0x268   :  { %v637_v13 = vrot.slane %v566_v8, %v636_v61  ;;  %v533_v15 = vpop.xlane.xlu1 %532 }
 0x269   :  { %v632_v14 = vsel %vm631_vm6, %v630_v10, %v625_v9  ;;  %v567_v18 = vadd.f32 %v1209_v38, %v533_v15  ;;  %v536_v19 = vpop.xlane.xlu0 %535 }
 0x26a   :  { %v568_v20 = vadd.f32 %v1209_v38, %v536_v19  ;;  %v639_v24 = vsel %vm638_vm7, %v637_v13, %v632_v14 }
 0x26b   :  { %v644_v21 = vrot.slane %v567_v18, %v643_v11 }
 0x26c   :  { %v651_v25 = vrot.slane %v568_v20, %v650_v16  ;;  %v539_v26 = vpop.xlane.xlu1 %538 }
 0x26d   :  { %v646_v30 = vsel %vm645_vm8, %v644_v21, %v639_v24  ;;  %v569_v31 = vadd.f32 %v1209_v38, %v539_v26  ;;  %v542_v32 = vpop.xlane.xlu0 %541 }
 0x26e   :  { %v570_v33 = vadd.f32 %v1209_v38, %v542_v32  ;;  %v653_v39 = vsel %vm652_vm9, %v651_v25, %v646_v30 }
 0x26f   :  { %v658_v35 = vrot.slane %v569_v31, %v657_v22 }
 0x270   :  { %v665_v40 = vrot.slane %v570_v33, %v664_v28  ;;  %v545_v41 = vpop.xlane.xlu1 %544 }
 0x271   :  { %v660_v44 = vsel %vm659_vm10, %v658_v35, %v653_v39  ;;  %v571_v45 = vadd.f32 %v1209_v38, %v545_v41  ;;  %v548_v46 = vpop.xlane.xlu0 %547 }
 0x272   :  { %v572_v47 = vadd.f32 %v1209_v38, %v548_v46  ;;  %v667_v51 = vsel %vm666_vm11, %v665_v40, %v660_v44 }
 0x273   :  { %v672_v48 = vrot.slane %v571_v45, %v671_v37 }
 0x274   :  { %v679_v52 = vrot.slane %v572_v47, %v678_v42  ;;  %v551_v53 = vpop.xlane.xlu1 %550 }
 0x275   :  { %v674_v55 = vsel %vm673_vm12, %v672_v48, %v667_v51  ;;  %v573_v56 = vadd.f32 %v1209_v38, %v551_v53  ;;  %v554_v57 = vpop.xlane.xlu0 %553 }
 0x276   :  { %v574_v58 = vadd.f32 %v1209_v38, %v554_v57  ;;  %v681_v61 = vsel %vm680_vm13, %v679_v52, %v674_v55 }
 0x277   :  { %v686_v59 = vrot.slane %v573_v56, %v685_v49 }
 0x278   :  { %v693_v62 = vrot.slane %v574_v58, %v692_v54  ;;  %v557_v63 = vpop.xlane.xlu1 %556 }
 0x279   :  { %v575_v34 = vadd.f32 %v1209_v38, %v557_v63  ;;  %v688_v0 = vsel %vm687_vm14, %v686_v59, %v681_v61 }
 0x27a   :  { %v695_v2 = vsel %vm694_vm15, %v693_v62, %v688_v0 }
 0x27b   :  { %v700_v1 = vrot.slane %v575_v34, %v699_v60 }
 0x27d   :  { %v702_v3 = vsel %vm701_vm0, %v700_v1, %v695_v2 }
 0x27e   :  { %704 = vst [vmem:[#allocation3] sm:$0x1] %v702_v3 }
 0x27f   :  { %961 = shalt.err (!%p958_p4)
}
 0x280   :  { %s962_s10 = scalar_lea.hbm %s1278_s7, 16 }
 0x281   :  { %p963_p5 = scmp.ne.s32.totalorder %s1278_s7, %s962_s10  ;;  %p966_p6 = scmp.lt.u32.totalorder %s962_s10, %s1278_s7 }
 0x283   :  { %p968_p7 = pnand %p966_p6, %p963_p5 }
 0x285   :  { %971 = shalt.err (!%p968_p7)
}
 0x286   :  { %714 = dma.vmem_to_hbm [thread:$0]  %s712_s29, 16, %s1278_s7, [#allocation4]  }
 0x287   :  { %972 = dma.done.wait [#allocation4], 16  }
 0x288   :  { %973 = vsyncadd [#allocation4], 4294967280 }
 0x289   :  { %718 = vsyncpa [#allocation4], 1 }

</bundles_post_ra>
